<compile_context>
chip_gen: v7x
topology: tpu7x:2x2x1
jax: 0.10.0
libtpu: 0.0.40
codegen_flags: <defaults>
</compile_context>

<pallas_src>
import functools

import jax
import jax.numpy as jnp
from jax.experimental import pallas as pl
from jax.experimental.pallas import tpu as pltpu

LOW_DIM = 128
PAD = 128          # lane-dense padding of the class dimension


def _round_up(x, m):
    return (x + m - 1) // m * m


# ------------------------------ Pallas kernel ------------------------------ #

def _teacher_kernel(xw_ref, xd_ref, w_ref, party_ref, out_ref,
                    accw_ref, accd_ref, *, num_class, inv_hw):
    """Grid = (row tiles ["parallel"], HW tiles ["arbitrary"]).

    Each step reduces one HW tile of both activation streams into per-row
    channel accumulators (global average pool).  On the last HW step the tiny
    head matmul + L2-normalize + masked softmax + get_correct_conf epilogue
    runs entirely in VMEM and writes one packed (TB, 256) slab:
        lanes [0:128)   = L2-normalized 128-d projection of img_w
        lanes [128:256) = corrected confidence of img_distill (lane-padded)
    """
    j = pl.program_id(1)

    @pl.when(j == 0)
    def _():
        accw_ref[...] = jnp.zeros_like(accw_ref)
        accd_ref[...] = jnp.zeros_like(accd_ref)

    # Partial global-average-pool: lane-axis reduce of the (TB, C, THW) tiles.
    accw_ref[...] += jnp.sum(xw_ref[...], axis=-1)
    accd_ref[...] += jnp.sum(xd_ref[...], axis=-1)

    @pl.when(j == pl.num_programs(1) - 1)
    def _():
        pooled_w = accw_ref[...] * inv_hw            # (TB, C) f32
        pooled_d = accd_ref[...] * inv_hw
        w = w_ref[...]                               # (C, 256): [cls_pad | feat]

        # --- feature head on the img_w stream (F.normalize(feat, dim=1)) ----
        f = jnp.dot(pooled_w, w[:, PAD:], preferred_element_type=jnp.float32)
        sq = jnp.sum(f * f, axis=-1, keepdims=True)
        feat = f * jax.lax.rsqrt(jnp.maximum(sq, 1e-24))   # clamp == torch eps

        # --- classifier head + masked softmax on the img_distill stream -----
        logits = jnp.dot(pooled_d, w[:, :PAD], preferred_element_type=jnp.float32)
        col = jax.lax.broadcasted_iota(jnp.int32, logits.shape, 1)
        valid = col < num_class
        z = jnp.where(valid, logits, -jnp.inf)
        m = jnp.max(z, axis=-1, keepdims=True)
        e = jnp.exp(z - m)                           # padded lanes -> exp(-inf)=0
        un_conf = e / jnp.sum(e, axis=-1, keepdims=True)

        # --- get_correct_conf (exact divisions, mirrors the torch reference) -
        party = party_ref[...]                       # padded lanes are exactly 0
        pc = un_conf * party
        fenmu = jnp.sum(pc, axis=-1, keepdims=True)
        part_conf = pc / fenmu
        cc = un_conf * (1.0 - party)
        comp_conf = cc / (jnp.sum(cc, axis=-1, keepdims=True) + 1e-20)
        comp_max = jnp.max(comp_conf, axis=-1, keepdims=True)
        part_min = jnp.min(jnp.where(valid, 1.0 - party + part_conf, jnp.inf),
                           axis=-1, keepdims=True)
        num = comp_max / fenmu                       # M * comp_max
        a = num / (num + part_min)
        a = jnp.where(a == 0.0, 1.0, a)              # a[a == 0] = 1
        conf = part_conf * a + comp_conf * (1.0 - a)

        out_ref[:, :PAD] = feat
        out_ref[:, PAD:] = conf


def fused_teacher_forward(xw, xd, w_full, party, *, hw, num_class,
                          tile_rows=None, tile_hw=None):
    """xw, xd: (R, C, HW) f32 activation streams; w_full: (C, 2*PAD) f32;
    party: (R, PAD) f32.  Returns (feat (R, 128), conf (R, num_class))."""
    R, C, HW = xw.shape
    assert xd.shape == (R, C, HW)
    assert w_full.shape == (C, 2 * PAD)
    assert party.shape == (R, PAD)

    # ---- row tile: aim for >= 2 row tiles when the batch allows (megacore).
    if tile_rows is None:
        Rp8 = _round_up(R, 8)                        # f32 sublane tile
        TB = min(512, _round_up((Rp8 + 1) // 2, 8)) if Rp8 >= 16 else Rp8
    else:
        TB = tile_rows
    Rp = _round_up(R, TB)

    # ---- HW tile: keep each f32 activation block <= ~2 MiB so two
    # double-buffered input streams stay well under the v5e 16 MiB scoped
    # VMEM default (and v7x's smaller per-core budget).
    if tile_hw is None:
        budget = 2 * 1024 * 1024
        max_thw = max(128, budget // (TB * C * 4) // 128 * 128)
        THW = min(_round_up(HW, 128), max_thw)
    else:
        THW = tile_hw
    Hp = _round_up(HW, THW)

    def pad_x(x):
        if Rp != R or Hp != HW:
            x = jnp.pad(x, ((0, Rp - R), (0, 0), (0, Hp - HW)))
        return x

    xw = pad_x(xw)
    xd = pad_x(xd)
    if Rp != R:
        # benign one-hot partY for padded rows keeps their (discarded)
        # epilogue arithmetic finite.
        pad_rows = jnp.zeros((Rp - R, PAD), jnp.float32).at[:, 0].set(1.0)
        party = jnp.concatenate([party, pad_rows], axis=0)

    grid = (Rp // TB, Hp // THW)
    kernel = functools.partial(_teacher_kernel, num_class=num_class,
                               inv_hw=1.0 / hw)

    out = pl.pallas_call(
        kernel,
        grid_spec=pltpu.PrefetchScalarGridSpec(
            num_scalar_prefetch=0,
            grid=grid,
            in_specs=[
                pl.BlockSpec((TB, C, THW), lambda i, j: (i, 0, j)),  # img_w
                pl.BlockSpec((TB, C, THW), lambda i, j: (i, 0, j)),  # img_distill
                pl.BlockSpec((C, 2 * PAD), lambda i, j: (0, 0)),     # resident weight
                pl.BlockSpec((TB, PAD), lambda i, j: (i, 0)),        # partY
            ],
            out_specs=pl.BlockSpec((TB, 2 * PAD), lambda i, j: (i, 0)),
            scratch_shapes=[pltpu.VMEM((TB, C), jnp.float32),
                            pltpu.VMEM((TB, C), jnp.float32)],
        ),
        out_shape=jax.ShapeDtypeStruct((Rp, 2 * PAD), jnp.float32),
        compiler_params=pltpu.CompilerParams(
            dimension_semantics=("parallel", "arbitrary")),
    )(xw, xd, w_full, party)

    feat = out[:R, :LOW_DIM]
    conf = out[:R, PAD:PAD + num_class]
    return feat, conf


# ------------------------- jitted step (whole forward) ---------------------- #

def _contea_step_impl(w_full, queue_feat, queue_dist, queue_partY, queue_target,
                      queue_ptr, img_w, img_distill, partY, target,
                      *, num_class):
    B, C, H, W = img_w.shape
    HW = H * W
    # Free reshapes (no data movement): NCHW -> (B, C, HW).
    xw = img_w.reshape(B, C, HW)
    xd = img_distill.reshape(B, C, HW)
    party_pad = jnp.pad(partY, ((0, 0), (0, PAD - num_class)))

    # NOTE: ShuffleBN's shuffle + unshuffle is an identity on every returned
    # tensor here (the synthetic encoder has no batch statistics), so it is
    # elided per the performance review.
    feat_k, output_k = fused_teacher_forward(
        xw, xd, w_full, party_pad, hw=HW, num_class=num_class)

    features = jnp.concatenate([feat_k, queue_feat], axis=0)
    partYs = jnp.concatenate([partY, queue_partY], axis=0)
    dists = jnp.concatenate([output_k, queue_dist], axis=0)
    # (torch also builds `targets = cat(target, queue_target)` but never uses it)

    # _dequeue_and_enqueue (in-place thanks to donated queue buffers)
    ptr = queue_ptr
    queue_feat = jax.lax.dynamic_update_slice(queue_feat, feat_k, (ptr, 0))
    queue_dist = jax.lax.dynamic_update_slice(queue_dist, output_k, (ptr, 0))
    queue_partY = jax.lax.dynamic_update_slice(queue_partY, partY, (ptr, 0))
    queue_target = jax.lax.dynamic_update_slice(queue_target, target, (ptr, 0))
    new_ptr = ((ptr + B) % queue_feat.shape[0]).astype(jnp.int32)

    return (features, partYs, dists, output_k,
            queue_feat, queue_dist, queue_partY, queue_target, new_ptr)


_contea_step = jax.jit(_contea_step_impl, static_argnames=("num_class",),
                       donate_argnums=(1, 2, 3, 4))


# ---------------------------------- module ---------------------------------- #

class ConTea:
    """JAX/Pallas re-implementation of the conTea forward pass."""

    def __init__(self, key, *, num_class, moco_queue, in_ch):
        assert num_class <= PAD, "classifier head is padded to 128 lanes"
        k1, k2, k3, k4, k5, k6 = jax.random.split(key, 6)
        self.num_class = num_class
        self.moco_queue = moco_queue
        self.in_ch = in_ch
        # TODO(synk): no concrete base_encoder architecture is specified; a
        # synthetic GAP(NCHW) -> (classifier head, normalized 128-d proj)
        # encoder stands in.
        self.w_cls = 0.1 * jax.random.normal(k1, (in_ch, num_class), jnp.float32)
        self.w_feat = 0.1 * jax.random.normal(k2, (in_ch, LOW_DIM), jnp.float32)
        w_cls_pad = jnp.pad(self.w_cls, ((0, 0), (0, PAD - num_class)))
        self.w_full = jnp.concatenate([w_cls_pad, self.w_feat], axis=1)  # (C, 256) f32
        # buffers (match torch __init__: randn queues, queue_feat normalized dim=0)
        qf = jax.random.normal(k3, (moco_queue, LOW_DIM), jnp.float32)
        self.queue_feat = qf / jnp.maximum(
            jnp.linalg.norm(qf, axis=0, keepdims=True), 1e-12)
        self.queue_dist = jax.random.normal(k4, (moco_queue, num_class), jnp.float32)
        self.queue_partY = jax.random.normal(k5, (moco_queue, num_class), jnp.float32)
        self.queue_target = jax.random.normal(k6, (moco_queue, 1), jnp.float32)
        self.queue_ptr = jnp.zeros((), jnp.int32)

    def __call__(self, img_w, img_s, img_distill, partY, target, shuffle_key=None):
        # img_s is unused in the reference forward; shuffle_key is accepted for
        # API compatibility but the ShuffleBN permutation is a no-op here.
        del img_s, shuffle_key
        bsz = img_w.shape[0]
        assert self.moco_queue % bsz == 0
        (features, partYs, dists, output_k,
         self.queue_feat, self.queue_dist, self.queue_partY, self.queue_target,
         self.queue_ptr) = _contea_step(
            self.w_full, self.queue_feat, self.queue_dist, self.queue_partY,
            self.queue_target, self.queue_ptr, img_w, img_distill, partY,
            target, num_class=self.num_class)
        return features, partYs, dists, output_k


# ----------------------------------- main ------------------------------------ #

if __name__ == "__main__":
    B, C, H, W = 4, 4, 16, 16
    NUM_CLASS = 10
    QUEUE = 16

    root = jax.random.PRNGKey(0)
    k_model, k_w, k_s, k_d, k_lab, k_mask, k_shuf = jax.random.split(root, 7)

    model = ConTea(k_model, num_class=NUM_CLASS, moco_queue=QUEUE, in_ch=C)

    img_w = jax.random.normal(k_w, (B, C, H, W), jnp.float32)
    img_s = jax.random.normal(k_s, (B, C, H, W), jnp.float32)
    img_distill = jax.random.normal(k_d, (B, C, H, W), jnp.float32)

    labels = jax.random.randint(k_lab, (B,), 0, NUM_CLASS)
    extra = (jax.random.uniform(k_mask, (B, NUM_CLASS)) < 0.3).astype(jnp.float32)
    partY = jnp.clip(extra + jax.nn.one_hot(labels, NUM_CLASS), 0.0, 1.0)
    target = labels.astype(jnp.float32).reshape(B, 1)

    features, partYs, dists, output_k = model(
        img_w, img_s, img_distill, partY, target, k_shuf)
    jax.block_until_ready((features, partYs, dists, output_k))

    # --- pure-JAX reference of the fused encoder + teacher epilogue ---------
    def _ref(img_w_, img_d_, partY_):
        pooled_w = jnp.mean(img_w_.reshape(B, C, -1), axis=-1)
        pooled_d = jnp.mean(img_d_.reshape(B, C, -1), axis=-1)
        f = pooled_w @ model.w_feat
        feat = f / jnp.maximum(jnp.linalg.norm(f, axis=1, keepdims=True), 1e-12)
        logits = pooled_d @ model.w_cls
        un = jax.nn.softmax(logits, axis=1)
        pc = un * partY_
        fenmu = pc.sum(1, keepdims=True)
        part_conf = pc / fenmu
        cc = un * (1 - partY_)
        comp_conf = cc / (cc.sum(1, keepdims=True) + 1e-20)
        comp_max = comp_conf.max(1, keepdims=True)
        part_min = (1 - partY_ + part_conf).min(1, keepdims=True)
        a = (comp_max / fenmu) / (comp_max / fenmu + part_min)
        a = jnp.where(a == 0.0, 1.0, a)
        return feat, part_conf * a + comp_conf * (1 - a)

    feat_ref, conf_ref = _ref(img_w, img_distill, partY)
    assert jnp.allclose(features[:B], feat_ref, atol=1e-3, rtol=1e-3)
    assert jnp.allclose(output_k, conf_ref, atol=1e-3, rtol=1e-3)

    assert features.shape == (B + QUEUE, LOW_DIM)
    assert partYs.shape == (B + QUEUE, NUM_CLASS)
    assert dists.shape == (B + QUEUE, NUM_CLASS)
    assert output_k.shape == (B, NUM_CLASS)
    print("KERNEL_OK")
</pallas_src>

<mosaic_0001>
module attributes {stable_mosaic.version = 11 : i64} {
  func.func @_teacher_kernel(%arg0: i32, %arg1: i32, %arg2: memref<8x4x256xf32, #tpu.memory_space<vmem>>, %arg3: memref<8x4x256xf32, #tpu.memory_space<vmem>>, %arg4: memref<4x256xf32, #tpu.memory_space<vmem>>, %arg5: memref<8x128xf32, #tpu.memory_space<vmem>>, %arg6: memref<8x256xf32, #tpu.memory_space<vmem>>, %arg7: memref<8x4xf32, #tpu.memory_space<vmem>>, %arg8: memref<8x4xf32, #tpu.memory_space<vmem>>) attributes {dimension_semantics = [#tpu.dimension_semantics<parallel>, #tpu.dimension_semantics<arbitrary>], iteration_bounds = array<i64: 1, 1>, scalar_prefetch = 0 : i64, scratch_operands = 2 : i64, tpu.core_type = #tpu.core_type<tc>, window_params = [{transform_indices = @transform_0, window_bounds = array<i64: 8, 4, 256>}, {transform_indices = @transform_1, window_bounds = array<i64: 8, 4, 256>}, {pipeline_mode = #tpu.pipeline_mode<synchronous>, transform_indices = @transform_2, window_bounds = array<i64: 4, 256>}, {transform_indices = @transform_3, window_bounds = array<i64: 8, 128>}, {transform_indices = @transform_4, window_bounds = array<i64: 8, 256>}]} {
    %c0_i32 = arith.constant 0 : i32
    %0 = arith.cmpi eq, %arg1, %c0_i32 : i32
    %1 = arith.extui %0 : i1 to i32
    %c0_i32_0 = arith.constant 0 : i32
    %2 = arith.cmpi ne, %1, %c0_i32_0 : i32
    scf.if %2 {
      %cst_17 = arith.constant 0.000000e+00 : f32
      %16 = vector.broadcast %cst_17 : f32 to vector<8x4xf32>
      %c0_18 = arith.constant 0 : index
      %c0_19 = arith.constant 0 : index
      %17 = vector.load %arg7[%c0_18, %c0_19] : memref<8x4xf32, #tpu.memory_space<vmem>>, vector<8x4xf32>
      tpu.vector_store %arg7[%c0_18, %c0_19], %16 {strides = array<i32>} : memref<8x4xf32, #tpu.memory_space<vmem>>, vector<8x4xf32>,
      %cst_20 = arith.constant 0.000000e+00 : f32
      %18 = vector.broadcast %cst_20 : f32 to vector<8x4xf32>
      %c0_21 = arith.constant 0 : index
      %c0_22 = arith.constant 0 : index
      %19 = vector.load %arg8[%c0_21, %c0_22] : memref<8x4xf32, #tpu.memory_space<vmem>>, vector<8x4xf32>
      tpu.vector_store %arg8[%c0_21, %c0_22], %18 {strides = array<i32>} : memref<8x4xf32, #tpu.memory_space<vmem>>, vector<8x4xf32>,
    } else {
    }
    %c0 = arith.constant 0 : index
    %c0_1 = arith.constant 0 : index
    %3 = vector.load %arg7[%c0, %c0_1] : memref<8x4xf32, #tpu.memory_space<vmem>>, vector<8x4xf32>
    %c0_2 = arith.constant 0 : index
    %c0_3 = arith.constant 0 : index
    %c0_4 = arith.constant 0 : index
    %4 = vector.load %arg2[%c0_2, %c0_3, %c0_4] : memref<8x4x256xf32, #tpu.memory_space<vmem>>, vector<8x4x256xf32>
    %cst = arith.constant dense<0.000000e+00> : vector<8x4xf32>
    %5 = vector.multi_reduction <add>, %4, %cst [2] : vector<8x4x256xf32> to vector<8x4xf32>
    %6 = arith.addf %3, %5 : vector<8x4xf32>
    %c0_5 = arith.constant 0 : index
    %c0_6 = arith.constant 0 : index
    %7 = vector.load %arg7[%c0_5, %c0_6] : memref<8x4xf32, #tpu.memory_space<vmem>>, vector<8x4xf32>
    tpu.vector_store %arg7[%c0_5, %c0_6], %6 {strides = array<i32>} : memref<8x4xf32, #tpu.memory_space<vmem>>, vector<8x4xf32>,
    %c0_7 = arith.constant 0 : index
    %c0_8 = arith.constant 0 : index
    %8 = vector.load %arg8[%c0_7, %c0_8] : memref<8x4xf32, #tpu.memory_space<vmem>>, vector<8x4xf32>
    %c0_9 = arith.constant 0 : index
    %c0_10 = arith.constant 0 : index
    %c0_11 = arith.constant 0 : index
    %9 = vector.load %arg3[%c0_9, %c0_10, %c0_11] : memref<8x4x256xf32, #tpu.memory_space<vmem>>, vector<8x4x256xf32>
    %cst_12 = arith.constant dense<0.000000e+00> : vector<8x4xf32>
    %10 = vector.multi_reduction <add>, %9, %cst_12 [2] : vector<8x4x256xf32> to vector<8x4xf32>
    %11 = arith.addf %8, %10 : vector<8x4xf32>
    %c0_13 = arith.constant 0 : index
    %c0_14 = arith.constant 0 : index
    %12 = vector.load %arg8[%c0_13, %c0_14] : memref<8x4xf32, #tpu.memory_space<vmem>>, vector<8x4xf32>
    tpu.vector_store %arg8[%c0_13, %c0_14], %11 {strides = array<i32>} : memref<8x4xf32, #tpu.memory_space<vmem>>, vector<8x4xf32>,
    %c0_i32_15 = arith.constant 0 : i32
    %13 = arith.cmpi eq, %arg1, %c0_i32_15 : i32
    %14 = arith.extui %13 : i1 to i32
    %c0_i32_16 = arith.constant 0 : i32
    %15 = arith.cmpi ne, %14, %c0_i32_16 : i32
    scf.if %15 {
      %c0_17 = arith.constant 0 : index
      %c0_18 = arith.constant 0 : index
      %16 = vector.load %arg7[%c0_17, %c0_18] : memref<8x4xf32, #tpu.memory_space<vmem>>, vector<8x4xf32>
      %cst_19 = arith.constant 3.906250e-03 : f32
      %17 = vector.broadcast %cst_19 : f32 to vector<8x4xf32>
      %18 = arith.mulf %16, %17 : vector<8x4xf32>
      %c0_20 = arith.constant 0 : index
      %c0_21 = arith.constant 0 : index
      %19 = vector.load %arg8[%c0_20, %c0_21] : memref<8x4xf32, #tpu.memory_space<vmem>>, vector<8x4xf32>
      %cst_22 = arith.constant 3.906250e-03 : f32
      %20 = vector.broadcast %cst_22 : f32 to vector<8x4xf32>
      %21 = arith.mulf %19, %20 : vector<8x4xf32>
      %c0_23 = arith.constant 0 : index
      %c0_24 = arith.constant 0 : index
      %22 = vector.load %arg4[%c0_23, %c0_24] : memref<4x256xf32, #tpu.memory_space<vmem>>, vector<4x256xf32>
      %23 = vector.extract_strided_slice %22 {offsets = [0, 128], sizes = [4, 128], strides = [1, 1]} : vector<4x256xf32> to vector<4x128xf32>
      %cst_25 = arith.constant dense<0.000000e+00> : vector<8x128xf32>
      %24 = tpu.matmul %18, %23, %cst_25 {dimension_numbers = #tpu.dot_dimension_numbers<[1], [0], [0], [1], [0, 0, 1, 1], [], []>} : vector<8x4xf32>, vector<4x128xf32>, vector<8x128xf32> -> vector<8x128xf32>
      %25 = arith.mulf %24, %24 : vector<8x128xf32>
      %cst_26 = arith.constant dense<0.000000e+00> : vector<8xf32>
      %26 = vector.multi_reduction <add>, %25, %cst_26 [1] : vector<8x128xf32> to vector<8xf32>
      %27 = vector.shape_cast %26 : vector<8xf32> to vector<8x1xf32>
      %cst_27 = arith.constant 1.000000e-24 : f32
      %28 = vector.broadcast %cst_27 : f32 to vector<8x1xf32>
      %29 = arith.maximumf %27, %28 : vector<8x1xf32>
      %30 = math.rsqrt %29 : vector<8x1xf32>
      %31 = vector.broadcast %30 : vector<8x1xf32> to vector<8x128xf32>
      %32 = arith.mulf %24, %31 : vector<8x128xf32>
      %33 = vector.extract_strided_slice %22 {offsets = [0, 0], sizes = [4, 128], strides = [1, 1]} : vector<4x256xf32> to vector<4x128xf32>
      %cst_28 = arith.constant dense<0.000000e+00> : vector<8x128xf32>
      %34 = tpu.matmul %21, %33, %cst_28 {dimension_numbers = #tpu.dot_dimension_numbers<[1], [0], [0], [1], [0, 0, 1, 1], [], []>} : vector<8x4xf32>, vector<4x128xf32>, vector<8x128xf32> -> vector<8x128xf32>
      %35 = tpu.iota {dimensions = array<i32: 1>} : vector<8x128xi32>
      %c10_i32 = arith.constant 10 : i32
      %36 = vector.broadcast %c10_i32 : i32 to vector<8x128xi32>
      %37 = arith.cmpi slt, %35, %36 : vector<8x128xi32>
      %cst_29 = arith.constant 0xFF800000 : f32
      %38 = vector.broadcast %cst_29 : f32 to vector<8x128xf32>
      %39 = arith.select %37, %34, %38 : vector<8x128xi1>, vector<8x128xf32>
      %cst_30 = arith.constant dense<0xFF800000> : vector<8xf32>
      %40 = vector.multi_reduction <maximumf>, %39, %cst_30 [1] : vector<8x128xf32> to vector<8xf32>
      %41 = vector.shape_cast %40 : vector<8xf32> to vector<8x1xf32>
      %42 = vector.broadcast %41 : vector<8x1xf32> to vector<8x128xf32>
      %43 = arith.subf %39, %42 : vector<8x128xf32>
      %44 = math.exp %43 : vector<8x128xf32>
      %cst_31 = arith.constant dense<0.000000e+00> : vector<8xf32>
      %45 = vector.multi_reduction <add>, %44, %cst_31 [1] : vector<8x128xf32> to vector<8xf32>
      %46 = vector.shape_cast %45 : vector<8xf32> to vector<8x1xf32>
      %47 = vector.broadcast %46 : vector<8x1xf32> to vector<8x128xf32>
      %48 = arith.divf %44, %47 : vector<8x128xf32>
      %c0_32 = arith.constant 0 : index
      %c0_33 = arith.constant 0 : index
      %49 = vector.load %arg5[%c0_32, %c0_33] : memref<8x128xf32, #tpu.memory_space<vmem>>, vector<8x128xf32>
      %50 = arith.mulf %48, %49 : vector<8x128xf32>
      %cst_34 = arith.constant dense<0.000000e+00> : vector<8xf32>
      %51 = vector.multi_reduction <add>, %50, %cst_34 [1] : vector<8x128xf32> to vector<8xf32>
      %52 = vector.shape_cast %51 : vector<8xf32> to vector<8x1xf32>
      %53 = vector.broadcast %52 : vector<8x1xf32> to vector<8x128xf32>
      %54 = arith.divf %50, %53 : vector<8x128xf32>
      %cst_35 = arith.constant 1.000000e+00 : f32
      %55 = vector.broadcast %cst_35 : f32 to vector<8x128xf32>
      %56 = arith.subf %55, %49 : vector<8x128xf32>
      %57 = arith.mulf %48, %56 : vector<8x128xf32>
      %cst_36 = arith.constant dense<0.000000e+00> : vector<8xf32>
      %58 = vector.multi_reduction <add>, %57, %cst_36 [1] : vector<8x128xf32> to vector<8xf32>
      %59 = vector.shape_cast %58 : vector<8xf32> to vector<8x1xf32>
      %cst_37 = arith.constant 9.99999968E-21 : f32
      %60 = vector.broadcast %cst_37 : f32 to vector<8x1xf32>
      %61 = arith.addf %59, %60 : vector<8x1xf32>
      %62 = vector.broadcast %61 : vector<8x1xf32> to vector<8x128xf32>
      %63 = arith.divf %57, %62 : vector<8x128xf32>
      %cst_38 = arith.constant dense<0xFF800000> : vector<8xf32>
      %64 = vector.multi_reduction <maximumf>, %63, %cst_38 [1] : vector<8x128xf32> to vector<8xf32>
      %65 = vector.shape_cast %64 : vector<8xf32> to vector<8x1xf32>
      %cst_39 = arith.constant 1.000000e+00 : f32
      %66 = vector.broadcast %cst_39 : f32 to vector<8x128xf32>
      %67 = arith.subf %66, %49 : vector<8x128xf32>
      %68 = arith.addf %67, %54 : vector<8x128xf32>
      %cst_40 = arith.constant 0x7F800000 : f32
      %69 = vector.broadcast %cst_40 : f32 to vector<8x128xf32>
      %70 = arith.select %37, %68, %69 : vector<8x128xi1>, vector<8x128xf32>
      %cst_41 = arith.constant dense<0x7F800000> : vector<8xf32>
      %71 = vector.multi_reduction <minimumf>, %70, %cst_41 [1] : vector<8x128xf32> to vector<8xf32>
      %72 = vector.shape_cast %71 : vector<8xf32> to vector<8x1xf32>
      %73 = arith.divf %65, %52 : vector<8x1xf32>
      %74 = arith.addf %73, %72 : vector<8x1xf32>
      %75 = arith.divf %73, %74 : vector<8x1xf32>
      %cst_42 = arith.constant 0.000000e+00 : f32
      %76 = vector.broadcast %cst_42 : f32 to vector<8x1xf32>
      %77 = arith.cmpf oeq, %75, %76 : vector<8x1xf32>
      %cst_43 = arith.constant 1.000000e+00 : f32
      %78 = vector.broadcast %cst_43 : f32 to vector<8x1xf32>
      %79 = arith.select %77, %78, %75 : vector<8x1xi1>, vector<8x1xf32>
      %80 = vector.broadcast %79 : vector<8x1xf32> to vector<8x128xf32>
      %81 = arith.mulf %54, %80 : vector<8x128xf32>
      %cst_44 = arith.constant 1.000000e+00 : f32
      %82 = vector.broadcast %cst_44 : f32 to vector<8x1xf32>
      %83 = arith.subf %82, %79 : vector<8x1xf32>
      %84 = vector.broadcast %83 : vector<8x1xf32> to vector<8x128xf32>
      %85 = arith.mulf %63, %84 : vector<8x128xf32>
      %86 = arith.addf %81, %85 : vector<8x128xf32>
      %c0_45 = arith.constant 0 : index
      %c0_46 = arith.constant 0 : index
      %87 = vector.load %arg6[%c0_45, %c0_46] : memref<8x256xf32, #tpu.memory_space<vmem>>, vector<8x128xf32>
      tpu.vector_store %arg6[%c0_45, %c0_46], %32 {strides = array<i32>} : memref<8x256xf32, #tpu.memory_space<vmem>>, vector<8x128xf32>,
      %c0_47 = arith.constant 0 : index
      %c128 = arith.constant 128 : index
      %88 = vector.load %arg6[%c0_47, %c128] : memref<8x256xf32, #tpu.memory_space<vmem>>, vector<8x128xf32>
      tpu.vector_store %arg6[%c0_47, %c128], %86 {strides = array<i32>} : memref<8x256xf32, #tpu.memory_space<vmem>>, vector<8x128xf32>,
    } else {
    }
    return
  }
  func.func @transform_0(%arg0: i32, %arg1: i32) -> (i32, i32, i32) {
    %c0_i32 = arith.constant 0 : i32
    %c0_i32_0 = arith.constant 0 : i32
    return %arg0, %c0_i32, %arg1 : i32, i32, i32
  }
  func.func @transform_1(%arg0: i32, %arg1: i32) -> (i32, i32, i32) {
    %c0_i32 = arith.constant 0 : i32
    %c0_i32_0 = arith.constant 0 : i32
    return %arg0, %c0_i32, %arg1 : i32, i32, i32
  }
  func.func @transform_2(%arg0: i32, %arg1: i32) -> (i32, i32) {
    %c0_i32 = arith.constant 0 : i32
    %c0_i32_0 = arith.constant 0 : i32
    %c0_i32_1 = arith.constant 0 : i32
    return %c0_i32, %c0_i32_0 : i32, i32
  }
  func.func @transform_3(%arg0: i32, %arg1: i32) -> (i32, i32) {
    %c0_i32 = arith.constant 0 : i32
    %c0_i32_0 = arith.constant 0 : i32
    return %arg0, %c0_i32 : i32, i32
  }
  func.func @transform_4(%arg0: i32, %arg1: i32) -> (i32, i32) {
    %c0_i32 = arith.constant 0 : i32
    %c0_i32_0 = arith.constant 0 : i32
    return %arg0, %c0_i32 : i32, i32
  }
}

</mosaic_0001>

<bundles_post_ra>
// kernel: _contea_step_impl.1
= control target key start
LH: loop header
LB: loop body
LE: loop exit
PB: predicated region body
PF: predicated region fallthrough
CT: control target
= control target key end

     0   :  { %vm57_vm0 = vcmask 1043456   ;;  %vm21_vm1 = vcmask 31744   ;;  %v542_v40 = vmov 0.0   ;;  %vm543_vm2 = vmmov 0   ;;  %s691_s1 = inlined_call_operand.vmem [shape: f32[8,4,256], index: 1, kind: input, shape index: {}]   ;;  %s692_s2 = inlined_call_operand.vmem [shape: f32[4,256], index: 2, kind: input, shape index: {}]   ;;  %s693_s0 = inlined_call_operand.vmem [shape: f32[8,4,256], index: 0, kind: input, shape index: {}]   ;;  %s694_s3 = inlined_call_operand.vmem [shape: f32[8,128], index: 3, kind: input, shape index: {}]   ;;  %s695_s4 = inlined_call_operand.vmem [shape: f32[8,256], index: 4, kind: output, shape index: {}]  }
   0x1   :  { %v159_v0 = vld [vmem:[%s691_s1] sm:$0xff]  ;;  %v161_v1 = vld [vmem:[%s691_s1 + $0x10] sm:$0xff]  ;;  %v160_v2 = vld [vmem:[%s691_s1 + $0x8] sm:$0xff]  ;;  %23 = vst.msk [vmem:[#allocation3] sm:$0xff] %vm21_vm1, %v542_v40  ;;  %506 = vmatprep.subr.mxu1 %v542_v40  ;;  %501 = vmatprep.subr.mxu0 %v542_v40  ;;  %vm140_vm3 = vcmask 1041409   ;;  %vm142_vm4 = vcmask 1042434  }
   0x2   :  { %v175_v3 = vcombine.high %v159_v0, %v159_v0  ;;  %v191_v4 = vsel %vm57_vm0, %v159_v0, 0.0  ;;  %v177_v5 = vcombine.high %v161_v1, %v161_v1  ;;  %v201_v6 = vsel %vm57_vm0, %v161_v1, 0.0  ;;  %v162_v7 = vld [vmem:[%s691_s1 + $0x18] sm:$0xff]  ;;  %v163_v8 = vld [vmem:[%s691_s1 + $0x20] sm:$0xff]  ;;  %v164_v12 = vld [vmem:[%s691_s1 + $0x28] sm:$0xff]  ;;  %22 = vst.msk [vmem:[#allocation2] sm:$0xff] %vm21_vm1, %v542_v40  ;;  %508 = vmatprep.mubr.msk.f32.mxu1 %vm543_vm2, %v542_v40  ;;  %503 = vmatprep.mubr.msk.f32.mxu0 %vm543_vm2, %v542_v40 }
   0x3   :  { %v176_v9 = vcombine.high %v160_v2, %v160_v2  ;;  %v196_v10 = vsel %vm57_vm0, %v160_v2, 0.0  ;;  %v178_v11 = vcombine.high %v162_v7, %v162_v7  ;;  %v206_v15 = vsel %vm57_vm0, %v162_v7, 0.0  ;;  %v165_v21 = vld [vmem:[%s691_s1 + $0x30] sm:$0xff]  ;;  %v166_v22 = vld [vmem:[%s691_s1 + $0x38] sm:$0xff]  ;;  %v288_v41 = vld [vmem:[%s692_s2] sm:$0xff] }
   0x4   :  { %v192_v13 = vsel %vm57_vm0, %v175_v3, 0.0  ;;  %v202_v14 = vsel %vm57_vm0, %v177_v5, 0.0  ;;  %v179_v16 = vcombine.high %v163_v8, %v163_v8  ;;  %v180_v23 = vcombine.high %v164_v12, %v164_v12  ;;  %507 = vmatpush3.msk.msra.mxu1 %vm57_vm0, %v288_v41  ;;  %v25_v43 = vld [vmem:[%s693_s0] sm:$0xff]  ;;  %v26_v44 = vld [vmem:[%s693_s0 + $0x8] sm:$0xff]  ;;  %v27_v45 = vld [vmem:[%s693_s0 + $0x10] sm:$0xff] }
   0x5   :  { %v193_v17 = vadd.f32 %v192_v13, %v191_v4  ;;  %v203_v18 = vadd.f32 %v202_v14, %v201_v6  ;;  %v197_v19 = vsel %vm57_vm0, %v176_v9, 0.0  ;;  %v207_v20 = vsel %vm57_vm0, %v178_v11, 0.0  ;;  %v28_v50 = vld [vmem:[%s693_s0 + $0x18] sm:$0xff]  ;;  %v29_v51 = vld [vmem:[%s693_s0 + $0x20] sm:$0xff]  ;;  %v30_v55 = vld [vmem:[%s693_s0 + $0x28] sm:$0xff] }
   0x6   :  { %v198_v24 = vadd.f32 %v197_v19, %v196_v10  ;;  %v208_v25 = vadd.f32 %v207_v20, %v206_v15  ;;  %v211_v26 = vsel %vm57_vm0, %v163_v8, 0.0  ;;  %v212_v27 = vsel %vm57_vm0, %v179_v16, 0.0  ;;  %v31_v0 = vld [vmem:[%s693_s0 + $0x30] sm:$0xff]  ;;  %v32_v1 = vld [vmem:[%s693_s0 + $0x38] sm:$0xff] }
   0x7   :  { %194 = vadd.xlane.f32.xlu0 %v193_v17  ;;  %204 = vadd.xlane.f32.xlu1 %v203_v18  ;;  %v216_v28 = vsel %vm57_vm0, %v164_v12, 0.0  ;;  %v217_v29 = vsel %vm57_vm0, %v180_v23, 0.0  ;;  %v181_v30 = vcombine.high %v165_v21, %v165_v21  ;;  %v182_v31 = vcombine.high %v166_v22, %v166_v22 }
   0x8   :  { %v213_v32 = vadd.f32 %v212_v27, %v211_v26  ;;  %v218_v33 = vadd.f32 %v217_v29, %v216_v28  ;;  %v221_v34 = vsel %vm57_vm0, %v165_v21, 0.0  ;;  %v226_v36 = vsel %vm57_vm0, %v166_v22, 0.0 }
   0x9   :  { %v222_v35 = vsel %vm57_vm0, %v181_v30, 0.0  ;;  %v227_v37 = vsel %vm57_vm0, %v182_v31, 0.0  ;;  %v290_v42 = vcombine.high %v288_v41, %v288_v41  ;;  %v41_v46 = vcombine.high %v25_v43, %v25_v43 }
   0xa   :  { %v223_v38 = vadd.f32 %v222_v35, %v221_v34  ;;  %v228_v39 = vadd.f32 %v227_v37, %v226_v36  ;;  %v58_v47 = vsel %vm57_vm0, %v25_v43, 0.0  ;;  %v42_v48 = vcombine.high %v26_v44, %v26_v44 }
   0xb   :  { %199 = vadd.xlane.f32.xlu0 %v198_v24  ;;  %209 = vadd.xlane.f32.xlu1 %v208_v25  ;;  %v63_v49 = vsel %vm57_vm0, %v26_v44, 0.0  ;;  %v43_v52 = vcombine.high %v27_v45, %v27_v45  ;;  %v68_v53 = vsel %vm57_vm0, %v27_v45, 0.0  ;;  %v44_v54 = vcombine.high %v28_v50, %v28_v50  ;;  %v158_v44 = vld [vmem:[#allocation3] sm:$0xff] }
   0xc   :  { %502 = vmatpush3.msk.msra.mxu0 %vm57_vm0, %v290_v42  ;;  %v59_v56 = vsel %vm57_vm0, %v41_v46, 0.0  ;;  %v64_v57 = vsel %vm57_vm0, %v42_v48, 0.0  ;;  %v73_v58 = vsel %vm57_vm0, %v28_v50, 0.0  ;;  %v45_v59 = vcombine.high %v29_v51, %v29_v51 }
   0xd   :  { %v60_v60 = vadd.f32 %v59_v56, %v58_v47  ;;  %v65_v61 = vadd.f32 %v64_v57, %v63_v49  ;;  %v69_v62 = vsel %vm57_vm0, %v43_v52, 0.0  ;;  %v74_v63 = vsel %vm57_vm0, %v44_v54, 0.0 }
   0xe   :  { %v46_v2 = vcombine.high %v30_v55, %v30_v55  ;;  %v70_v3 = vadd.f32 %v69_v62, %v68_v53  ;;  %v75_v4 = vadd.f32 %v74_v63, %v73_v58  ;;  %v78_v5 = vsel %vm57_vm0, %v29_v51, 0.0 }
   0xf   :  { %214 = vadd.xlane.f32.xlu0 %v213_v32  ;;  %219 = vadd.xlane.f32.xlu1 %v218_v33  ;;  %v79_v6 = vsel %vm57_vm0, %v45_v59, 0.0  ;;  %v83_v7 = vsel %vm57_vm0, %v30_v55, 0.0  ;;  %v47_v9 = vcombine.high %v31_v0, %v31_v0  ;;  %v48_v10 = vcombine.high %v32_v1, %v32_v1 }
  0x10   :  { %v84_v8 = vsel %vm57_vm0, %v46_v2, 0.0  ;;  %v80_v11 = vadd.f32 %v79_v6, %v78_v5  ;;  %v88_v13 = vsel %vm57_vm0, %v31_v0, 0.0  ;;  %v93_v15 = vsel %vm57_vm0, %v32_v1, 0.0 }
  0x11   :  { %v85_v12 = vadd.f32 %v84_v8, %v83_v7  ;;  %v89_v14 = vsel %vm57_vm0, %v47_v9, 0.0  ;;  %v94_v16 = vsel %vm57_vm0, %v48_v10, 0.0  ;;  %v106_v19 = vlaneseq  ;;  %v24_v7 = vld [vmem:[#allocation2] sm:$0xff] }
  0x12   :  { %v90_v17 = vadd.f32 %v89_v14, %v88_v13  ;;  %v95_v18 = vadd.f32 %v94_v16, %v93_v15  ;;  %vm144_vm5 = vcmask 1043459   ;;  %vm146_vm6 = vcmask 1044484  }
  0x13   :  { %224 = vadd.xlane.f32.xlu0 %v223_v38  ;;  %229 = vadd.xlane.f32.xlu1 %v228_v39  ;;  %v656_v20 = vand.u32 127, %v106_v19  ;;  %v109_v21 = vshrl.u32 %v106_v19, 7  ;;  %vm148_vm7 = vcmask 1045509   ;;  %vm150_vm8 = vcmask 1046534  }
  0x14   :  { %vm152_vm9 = vcmask 1047559  }
  0x15   :  { %v110_v24 = vsub.s32 %v656_v20, %v109_v21  ;;  %vm447_vm10 = vcmp.lt.s32.totalorder %v656_v20, 10 }
  0x17   :  { %61 = vadd.xlane.f32.xlu0 %v60_v60  ;;  %66 = vadd.xlane.f32.xlu1 %v65_v61 }
  0x1b   :  { %71 = vadd.xlane.f32.xlu0 %v70_v3  ;;  %76 = vadd.xlane.f32.xlu1 %v75_v4 }
  0x1f   :  { %81 = vadd.xlane.f32.xlu0 %v80_v11  ;;  %86 = vadd.xlane.f32.xlu1 %v85_v12 }
  0x23   :  { %91 = vadd.xlane.f32.xlu0 %v90_v17  ;;  %96 = vadd.xlane.f32.xlu1 %v95_v18 }
  0x94   :  { %v195_v22 = vpop.xlane.xlu0 %194  ;;  %v205_v23 = vpop.xlane.xlu1 %204 }
  0x95   :  { %v242_v27 = vrot.slane %v195_v22, %v110_v24  ;;  %v250_v30 = vrot.slane %v205_v23, %v110_v24 }
  0x98   :  { %v200_v25 = vpop.xlane.xlu0 %199  ;;  %v210_v26 = vpop.xlane.xlu1 %209 }
  0x99   :  { %v246_v28 = vrot.slane %v200_v25, %v110_v24  ;;  %v254_v29 = vrot.slane %v210_v26, %v110_v24 }
  0x9b   :  { %v271_v31 = vsel %vm140_vm3, %v246_v28, %v242_v27 }
  0x9c   :  { %v272_v32 = vsel %vm142_vm4, %v250_v30, %v271_v31  ;;  %v215_v33 = vpop.xlane.xlu0 %214  ;;  %v220_v34 = vpop.xlane.xlu1 %219 }
  0x9d   :  { %v273_v35 = vsel %vm144_vm5, %v254_v29, %v272_v32  ;;  %v258_v36 = vrot.slane %v215_v33, %v110_v24  ;;  %v262_v37 = vrot.slane %v220_v34, %v110_v24 }
  0x9f   :  { %v274_v38 = vsel %vm146_vm6, %v258_v36, %v273_v35 }
  0xa0   :  { %v225_v39 = vpop.xlane.xlu0 %224  ;;  %v230_v40 = vpop.xlane.xlu1 %229  ;;  %v275_v43 = vsel %vm148_vm7, %v262_v37, %v274_v38 }
  0xa1   :  { %v266_v41 = vrot.slane %v225_v39, %v110_v24  ;;  %v270_v42 = vrot.slane %v230_v40, %v110_v24 }
  0xa3   :  { %v276_v45 = vsel %vm150_vm8, %v266_v41, %v275_v43 }
  0xa4   :  { %v277_v46 = vsel %vm152_vm9, %v270_v42, %v276_v45  ;;  %v62_v50 = vpop.xlane.xlu0 %61  ;;  %v67_v51 = vpop.xlane.xlu1 %66 }
  0xa5   :  { %v279_v47 = vadd.f32 %v277_v46, %v158_v44  ;;  %v111_v52 = vrot.slane %v62_v50, %v110_v24  ;;  %v115_v53 = vrot.slane %v67_v51, %v110_v24 }
  0xa7   :  { %280 = vst.msk [vmem:[#allocation3] sm:$0xff] %vm21_vm1, %v279_v47  ;;  %v141_v54 = vsel %vm140_vm3, %v115_v53, %v111_v52 }
  0xa8   :  { %v72_v55 = vpop.xlane.xlu0 %71  ;;  %v77_v56 = vpop.xlane.xlu1 %76 }
  0xa9   :  { %v119_v57 = vrot.slane %v72_v55, %v110_v24  ;;  %v123_v58 = vrot.slane %v77_v56, %v110_v24 }
  0xab   :  { %v143_v59 = vsel %vm142_vm4, %v119_v57, %v141_v54 }
  0xac   :  { %v145_v60 = vsel %vm144_vm5, %v123_v58, %v143_v59  ;;  %v82_v61 = vpop.xlane.xlu0 %81  ;;  %v87_v62 = vpop.xlane.xlu1 %86 }
  0xad   :  { %v127_v63 = vrot.slane %v82_v61, %v110_v24  ;;  %v131_v0 = vrot.slane %v87_v62, %v110_v24 }
  0xae   :  { %v286_v48 = vld [vmem:[#allocation3] sm:$0xff] }
  0xaf   :  { %v287_v49 = vmul.f32 0.00390625, %v286_v48  ;;  %v147_v1 = vsel %vm146_vm6, %v127_v63, %v145_v60 }
  0xb0   :  { %v149_v2 = vsel %vm148_vm7, %v131_v0, %v147_v1  ;;  %v92_v3 = vpop.xlane.xlu0 %91  ;;  %v97_v4 = vpop.xlane.xlu1 %96 }
  0xb1   :  { %509 = vmatmul.mubr.msk.f32.vlgmr.msra.gmra.mrb[0].mxu1 %vm21_vm1, %v287_v49  ;;  %v135_v5 = vrot.slane %v92_v3, %v110_v24  ;;  %v139_v6 = vrot.slane %v97_v4, %v110_v24  ;;  %v458_v24 = vld [vmem:[%s694_s3] sm:$0xff] }
  0xb2   :  { %v464_v25 = vsub.f32 1.0, %v458_v24 }
  0xb3   :  { %v151_v8 = vsel %vm150_vm8, %v135_v5, %v149_v2 }
  0xb4   :  { %v153_v9 = vsel %vm152_vm9, %v139_v6, %v151_v8 }
  0xb5   :  { %v155_v10 = vadd.f32 %v153_v9, %v24_v7 }
  0xb7   :  { %157 = vst.msk [vmem:[#allocation2] sm:$0xff] %vm21_vm1, %v155_v10 }
  0xbe   :  { %v284_v14 = vld [vmem:[#allocation2] sm:$0xff] }
  0xbf   :  { %v285_v15 = vmul.f32 0.00390625, %v284_v14 }
  0xc1   :  { %504 = vmatmul.mubr.msk.f32.vlgmr.msra.gmra.mrb[0].mxu0 %vm21_vm1, %v285_v15 }
 0x184   :  { %v443_v11 = vpop.f32.mrb[0].mxu1 }
 0x185   :  { %v510_v12 = vpop.f32.mrb[1].mxu1  ;;  %v448_v13 = vsel %vm447_vm10, %v443_v11, -inf }
 0x186   :  { %449 = vmax.xlane.f32.xlu0 %v448_v13 }
 0x194   :  { %v362_v21 = vpop.f32.mrb[0].mxu0 }
 0x195   :  { %v505_v22 = vpop.f32.mrb[1].mxu0  ;;  %v366_v39 = vmul.f32 %v362_v21, %v362_v21 }
 0x213   :  { %v450_v16 = vpop.xlane.xlu0 %449 }
 0x214   :  { %v451_v17 = vsub.f32 %v448_v13, %v450_v16 }
 0x216   :  { %v452_v18 = vmul.f32 1.442695, %v451_v17 }
 0x218   :  { %530 = vpow2.f32 %v452_v18 }
 0x222   :  { %v531_v19 = vpop.eup %530 }
 0x223   :  { %454 = vadd.xlane.f32.xlu1 %v531_v19 }
 0x2b0   :  { %v455_v23 = vpop.xlane.xlu1 %454 }
 0x2b1   :  { %532 = vrcp.f32 %v455_v23 }
 0x2bb   :  { %v533_v26 = vpop.eup %532 }
 0x2bc   :  { %v457_v27 = vmul.f32 %v533_v26, %v531_v19 }
 0x2be   :  { %v465_v28 = vmul.f32 %v464_v25, %v457_v27  ;;  %v459_v29 = vmul.f32 %v458_v24, %v457_v27 }
 0x2c0   :  { %466 = vadd.xlane.f32.xlu0 %v465_v28  ;;  %460 = vadd.xlane.f32.xlu1 %v459_v29 }
 0x34d   :  { %v467_v30 = vpop.xlane.xlu0 %466  ;;  %v461_v31 = vpop.xlane.xlu1 %460 }
 0x34e   :  { %v468_v32 = vadd.f32 1e-20, %v467_v30  ;;  %534 = vrcp.f32 %v461_v31 }
 0x350   :  { %536 = vrcp.f32 %v468_v32 }
 0x358   :  { %v535_v33 = vpop.eup %534 }
 0x359   :  { %v463_v34 = vmul.f32 %v535_v33, %v459_v29 }
 0x35a   :  { %v537_v35 = vpop.eup %536 }
 0x35b   :  { %v470_v36 = vmul.f32 %v537_v35, %v465_v28  ;;  %v473_v37 = vadd.f32 %v464_v25, %v463_v34 }
 0x35d   :  { %471 = vmax.xlane.f32.xlu0 %v470_v36  ;;  %v474_v38 = vsel %vm447_vm10, %v473_v37, inf }
 0x35e   :  { %475 = vmin.xlane.f32.xlu1 %v474_v38 }
 0x361   :  { %367 = vadd.xlane.f32.xlu0 %v366_v39 }
 0x3ea   :  { %v472_v40 = vpop.xlane.xlu0 %471 }
 0x3eb   :  { %v477_v41 = vmul.f32 %v535_v33, %v472_v40  ;;  %v476_v42 = vpop.xlane.xlu1 %475 }
 0x3ed   :  { %v478_v43 = vadd.f32 %v477_v41, %v476_v42 }
 0x3ee   :  { %v368_v44 = vpop.xlane.xlu0 %367 }
 0x3ef   :  { %538 = vrcp.f32 %v478_v43  ;;  %v369_v45 = vmax.f32 %v368_v44, 1e-24 }
 0x3f1   :  { %540 = vrsqrt.f32 %v369_v45 }
 0x3f9   :  { %v539_v46 = vpop.eup %538 }
 0x3fa   :  { %v480_v47 = vmul.f32 %v539_v46, %v477_v41 }
 0x3fb   :  { %v541_v48 = vpop.eup %540 }
 0x3fc   :  { %vm481_vm11 = vcmp.eq.f32.partialorder %v480_v47, 0.0  ;;  %v371_v49 = vmul.f32 %v541_v48, %v362_v21 }
 0x3fd   :  { %v482_v50 = vsel %vm481_vm11, 1.0, %v480_v47 }
 0x3fe   :  { %v484_v51 = vsub.f32 1.0, %v482_v50  ;;  %487 = vst [vmem:[%s695_s4] sm:$0xff] %v371_v49  ;;  %v483_v20 = vmul.f32 %v482_v50, %v463_v34 }
 0x400   :  { %v485_v52 = vmul.f32 %v484_v51, %v470_v36 }
 0x402   :  { %v486_v53 = vadd.f32 %v485_v52, %v483_v20 }
 0x404   :  { %488 = vst [vmem:[%s695_s4 + $0x8] sm:$0xff] %v486_v53 }

</bundles_post_ra>
